<compile_context>
chip_gen: v5e
topology: v5e:2x2
jax: 0.10.0
libtpu: 0.0.40
codegen_flags: <defaults>
</compile_context>

<pallas_src>
import functools

import jax
import jax.numpy as jnp
from jax import lax
from jax.experimental import pallas as pl
from jax.experimental.pallas import tpu as pltpu

TILE_B = 16384   # batch rows per grid step (multiple of CHUNK)
CHUNK = 128      # batch rows per inner sub-chunk (bounds vreg/VMEM pressure)


def _round_up(n, m):
    return ((n + m - 1) // m) * m


def mlp_kernel(x_ref, w1_ref, b1_ref, w2_ref, b2_ref, w3_ref, b3_ref, o_ref,
               *, n_chunks, chunk):
    # Hoist weight/bias loads and bias broadcasts above the chunk loop.
    w1t = w1_ref[...]                                     # (6, 64)  (in, out)
    w2t = w2_ref[...]                                     # (64, 32)
    w3r = w3_ref[...]                                     # (1, 32)
    b3v = b3_ref[...]                                     # (1, 1)
    h1_dim = w1t.shape[1]
    h2_dim = w2t.shape[1]
    b1b = jnp.broadcast_to(b1_ref[...], (chunk, h1_dim))  # (chunk, 64)
    b2b = jnp.broadcast_to(b2_ref[...], (chunk, h2_dim))  # (chunk, 32)

    def body(c, carry):
        r0 = pl.multiple_of(c * chunk, chunk)
        xc = x_ref[pl.ds(r0, chunk), :]                                   # (chunk, 6)
        # fc1 + ReLU
        h1 = jnp.dot(xc, w1t, preferred_element_type=jnp.float32) + b1b   # (chunk, 64)
        h1 = jnp.maximum(h1, 0.0)
        # fc2 + ReLU
        h2 = jnp.dot(h1, w2t, preferred_element_type=jnp.float32) + b2b   # (chunk, 32)
        h2 = jnp.maximum(h2, 0.0)
        # fc3: 1-row output -> VPU multiply + lane reduce (skip the MXU entirely).
        y = jnp.sum(h2 * w3r, axis=1, keepdims=True) + b3v                # (chunk, 1)
        o_ref[pl.ds(r0, chunk), :] = y.astype(o_ref.dtype)
        return carry

    lax.fori_loop(0, n_chunks, body, None)


def stock_predictor_forward(x, params, tile_b: int = TILE_B):
    """x: (B, 6) float32. params: torch-native weights w (out,in), biases b (out,).
    Returns (B, 1) float32."""
    w1, b1 = params["w1"], params["b1"]
    w2, b2 = params["w2"], params["b2"]
    w3, b3 = params["w3"], params["b3"]

    B, F = x.shape
    chunk = CHUNK
    tile = _round_up(min(tile_b, _round_up(B, chunk)), chunk)
    n_chunks = tile // chunk

    # Only pad when a single tile exceeds B (keeps block <= array); at large B the
    # ragged last tile is handled by Pallas partial-block masking -- no HBM pad pass.
    if B < tile:
        x = jnp.pad(x, ((0, tile - B), (0, 0)))
    B_run = x.shape[0]
    n_tiles = pl.cdiv(B_run, tile)

    # Torch-native (out, in) weights -> (in, out) once on the host (tiny arrays),
    # so every in-kernel dot is the plain MXU orientation.
    w1t = w1.T                      # (6, 64)
    w2t = w2.T                      # (64, 32)
    w3r = w3.reshape(1, -1)         # (1, 32)
    b1r = b1.reshape(1, -1)         # (1, 64)
    b2r = b2.reshape(1, -1)         # (1, 32)
    b3r = b3.reshape(1, 1)          # (1, 1)

    # Constant block index -> weights/biases stay VMEM-resident across all grid steps.
    resident = lambda shape: pl.BlockSpec(shape, lambda i: (0, 0))

    kernel = functools.partial(mlp_kernel, n_chunks=n_chunks, chunk=chunk)

    out = pl.pallas_call(
        kernel,
        out_shape=jax.ShapeDtypeStruct((B_run, 1), jnp.float32),
        grid=(n_tiles,),
        in_specs=[
            pl.BlockSpec((tile, F), lambda i: (i, 0)),   # contiguous x slab, pipelined
            resident(w1t.shape), resident(b1r.shape),
            resident(w2t.shape), resident(b2r.shape),
            resident(w3r.shape), resident(b3r.shape),
        ],
        out_specs=pl.BlockSpec((tile, 1), lambda i: (i, 0)),
        compiler_params=pltpu.CompilerParams(
            dimension_semantics=("parallel",),           # shard batch tiles across TCs
            vmem_limit_bytes=48 * 1024 * 1024,           # lane-padded tiles at 16K rows
        ),
    )(x, w1t, b1r, w2t, b2r, w3r, b3r)

    return out[:B]


def init_params(key):
    """Deterministic init matching nn.Linear: weight (out, in), bias (out,)."""
    ks = jax.random.split(key, 6)

    def lin(kw, kb, fan_in, fan_out):
        bound = 1.0 / jnp.sqrt(fan_in)
        w = jax.random.uniform(kw, (fan_out, fan_in), jnp.float32, -bound, bound)
        b = jax.random.uniform(kb, (fan_out,), jnp.float32, -bound, bound)
        return w, b

    w1, b1 = lin(ks[0], ks[1], 6, 64)
    w2, b2 = lin(ks[2], ks[3], 64, 32)
    w3, b3 = lin(ks[4], ks[5], 32, 1)
    return dict(w1=w1, b1=b1, w2=w2, b2=b2, w3=w3, b3=b3)


def reference_forward(x, p):
    h1 = jnp.maximum(x @ p["w1"].T + p["b1"], 0.0)
    h2 = jnp.maximum(h1 @ p["w2"].T + p["b2"], 0.0)
    return h2 @ p["w3"].T + p["b3"]


if __name__ == "__main__":
    key = jax.random.PRNGKey(0)
    kx, kp, kx2 = jax.random.split(key, 3)
    params = init_params(kp)

    # Small batch of feature vectors, each with 6 stock features.
    x = jax.random.normal(kx, (8, 6), jnp.float32)
    out = jax.block_until_ready(jax.jit(stock_predictor_forward)(x, params))
    ref = reference_forward(x, params)
    assert out.shape == (8, 1)
    assert jnp.allclose(out, ref, atol=1e-5, rtol=1e-5)

    # Exercise the multi-tile path with a ragged last block (no padding taken).
    x2 = jax.random.normal(kx2, (300, 6), jnp.float32)
    fwd_small_tile = jax.jit(functools.partial(stock_predictor_forward, tile_b=128))
    out2 = jax.block_until_ready(fwd_small_tile(x2, params))
    ref2 = reference_forward(x2, params)
    assert out2.shape == (300, 1)
    assert jnp.allclose(out2, ref2, atol=1e-5, rtol=1e-5)

    print("KERNEL_OK")
</pallas_src>

<mosaic_0001>
module attributes {stable_mosaic.version = 11 : i64} {
  func.func @mlp_kernel(%arg0: i32, %arg1: memref<128x6xf32, #tpu.memory_space<vmem>>, %arg2: memref<6x64xf32, #tpu.memory_space<vmem>>, %arg3: memref<1x64xf32, #tpu.memory_space<vmem>>, %arg4: memref<64x32xf32, #tpu.memory_space<vmem>>, %arg5: memref<1x32xf32, #tpu.memory_space<vmem>>, %arg6: memref<1x32xf32, #tpu.memory_space<vmem>>, %arg7: memref<1x1xf32, #tpu.memory_space<vmem>>, %arg8: memref<128x1xf32, #tpu.memory_space<vmem>>) attributes {dimension_semantics = [#tpu.dimension_semantics<parallel>], iteration_bounds = array<i64: 1>, scalar_prefetch = 0 : i64, scratch_operands = 0 : i64, tpu.core_type = #tpu.core_type<tc>, window_params = [{transform_indices = @transform_0, window_bounds = array<i64: 128, 6>}, {pipeline_mode = #tpu.pipeline_mode<synchronous>, transform_indices = @transform_1, window_bounds = array<i64: 6, 64>}, {pipeline_mode = #tpu.pipeline_mode<synchronous>, transform_indices = @transform_2, window_bounds = array<i64: 1, 64>}, {pipeline_mode = #tpu.pipeline_mode<synchronous>, transform_indices = @transform_3, window_bounds = array<i64: 64, 32>}, {pipeline_mode = #tpu.pipeline_mode<synchronous>, transform_indices = @transform_4, window_bounds = array<i64: 1, 32>}, {pipeline_mode = #tpu.pipeline_mode<synchronous>, transform_indices = @transform_5, window_bounds = array<i64: 1, 32>}, {pipeline_mode = #tpu.pipeline_mode<synchronous>, transform_indices = @transform_6, window_bounds = array<i64: 1, 1>}, {transform_indices = @transform_7, window_bounds = array<i64: 128, 1>}]} {
    %c0 = arith.constant 0 : index
    %c0_0 = arith.constant 0 : index
    %0 = vector.load %arg2[%c0, %c0_0] : memref<6x64xf32, #tpu.memory_space<vmem>>, vector<6x64xf32>
    %c0_1 = arith.constant 0 : index
    %c0_2 = arith.constant 0 : index
    %1 = vector.load %arg4[%c0_1, %c0_2] : memref<64x32xf32, #tpu.memory_space<vmem>>, vector<64x32xf32>
    %c0_3 = arith.constant 0 : index
    %c0_4 = arith.constant 0 : index
    %2 = vector.load %arg6[%c0_3, %c0_4] : memref<1x32xf32, #tpu.memory_space<vmem>>, vector<1x32xf32>
    %c0_5 = arith.constant 0 : index
    %c0_6 = arith.constant 0 : index
    %3 = vector.load %arg7[%c0_5, %c0_6] : memref<1x1xf32, #tpu.memory_space<vmem>>, vector<1x1xf32>
    %c0_7 = arith.constant 0 : index
    %c0_8 = arith.constant 0 : index
    %4 = vector.load %arg3[%c0_7, %c0_8] : memref<1x64xf32, #tpu.memory_space<vmem>>, vector<1x64xf32>
    %5 = vector.shape_cast %4 : vector<1x64xf32> to vector<1x64xf32>
    %6 = vector.broadcast %5 : vector<1x64xf32> to vector<128x64xf32>
    %c0_9 = arith.constant 0 : index
    %c0_10 = arith.constant 0 : index
    %7 = vector.load %arg5[%c0_9, %c0_10] : memref<1x32xf32, #tpu.memory_space<vmem>>, vector<1x32xf32>
    %8 = vector.shape_cast %7 : vector<1x32xf32> to vector<1x32xf32>
    %9 = vector.broadcast %8 : vector<1x32xf32> to vector<128x32xf32>
    %c0_i32 = arith.constant 0 : i32
    %c128_i32 = arith.constant 128 : i32
    %10 = arith.muli %c0_i32, %c128_i32 : i32
    %11 = tpu.assume_multiple %10, 128 : i32
    %12 = arith.index_cast %11 : i32 to index
    %c0_11 = arith.constant 0 : index
    %13 = vector.load %arg1[%12, %c0_11] : memref<128x6xf32, #tpu.memory_space<vmem>>, vector<128x6xf32>
    %cst = arith.constant dense<0.000000e+00> : vector<128x64xf32>
    %14 = tpu.matmul %13, %0, %cst {dimension_numbers = #tpu.dot_dimension_numbers<[1], [0], [0], [1], [0, 0, 1, 1], [], []>} : vector<128x6xf32>, vector<6x64xf32>, vector<128x64xf32> -> vector<128x64xf32>
    %15 = arith.addf %14, %6 : vector<128x64xf32>
    %cst_12 = arith.constant 0.000000e+00 : f32
    %16 = vector.broadcast %cst_12 : f32 to vector<128x64xf32>
    %17 = arith.maximumf %15, %16 : vector<128x64xf32>
    %cst_13 = arith.constant dense<0.000000e+00> : vector<128x32xf32>
    %18 = tpu.matmul %17, %1, %cst_13 {dimension_numbers = #tpu.dot_dimension_numbers<[1], [0], [0], [1], [0, 0, 1, 1], [], []>} : vector<128x64xf32>, vector<64x32xf32>, vector<128x32xf32> -> vector<128x32xf32>
    %19 = arith.addf %18, %9 : vector<128x32xf32>
    %cst_14 = arith.constant 0.000000e+00 : f32
    %20 = vector.broadcast %cst_14 : f32 to vector<128x32xf32>
    %21 = arith.maximumf %19, %20 : vector<128x32xf32>
    %22 = vector.broadcast %2 : vector<1x32xf32> to vector<128x32xf32>
    %23 = arith.mulf %21, %22 : vector<128x32xf32>
    %cst_15 = arith.constant dense<0.000000e+00> : vector<128xf32>
    %24 = vector.multi_reduction <add>, %23, %cst_15 [1] : vector<128x32xf32> to vector<128xf32>
    %25 = vector.shape_cast %24 : vector<128xf32> to vector<128x1xf32>
    %26 = vector.broadcast %3 : vector<1x1xf32> to vector<128x1xf32>
    %27 = arith.addf %25, %26 : vector<128x1xf32>
    %28 = arith.index_cast %11 : i32 to index
    %c0_16 = arith.constant 0 : index
    %29 = vector.load %arg8[%28, %c0_16] : memref<128x1xf32, #tpu.memory_space<vmem>>, vector<128x1xf32>
    tpu.vector_store %arg8[%28, %c0_16], %27 {strides = array<i32>} : memref<128x1xf32, #tpu.memory_space<vmem>>, vector<128x1xf32>,
    %c1_i32 = arith.constant 1 : i32
    return
  }
  func.func @transform_0(%arg0: i32) -> (i32, i32) {
    %c0_i32 = arith.constant 0 : i32
    %c0_i32_0 = arith.constant 0 : i32
    return %arg0, %c0_i32 : i32, i32
  }
  func.func @transform_1(%arg0: i32) -> (i32, i32) {
    %c0_i32 = arith.constant 0 : i32
    %c0_i32_0 = arith.constant 0 : i32
    %c0_i32_1 = arith.constant 0 : i32
    return %c0_i32, %c0_i32_0 : i32, i32
  }
  func.func @transform_2(%arg0: i32) -> (i32, i32) {
    %c0_i32 = arith.constant 0 : i32
    %c0_i32_0 = arith.constant 0 : i32
    %c0_i32_1 = arith.constant 0 : i32
    return %c0_i32, %c0_i32_0 : i32, i32
  }
  func.func @transform_3(%arg0: i32) -> (i32, i32) {
    %c0_i32 = arith.constant 0 : i32
    %c0_i32_0 = arith.constant 0 : i32
    %c0_i32_1 = arith.constant 0 : i32
    return %c0_i32, %c0_i32_0 : i32, i32
  }
  func.func @transform_4(%arg0: i32) -> (i32, i32) {
    %c0_i32 = arith.constant 0 : i32
    %c0_i32_0 = arith.constant 0 : i32
    %c0_i32_1 = arith.constant 0 : i32
    return %c0_i32, %c0_i32_0 : i32, i32
  }
  func.func @transform_5(%arg0: i32) -> (i32, i32) {
    %c0_i32 = arith.constant 0 : i32
    %c0_i32_0 = arith.constant 0 : i32
    %c0_i32_1 = arith.constant 0 : i32
    return %c0_i32, %c0_i32_0 : i32, i32
  }
  func.func @transform_6(%arg0: i32) -> (i32, i32) {
    %c0_i32 = arith.constant 0 : i32
    %c0_i32_0 = arith.constant 0 : i32
    %c0_i32_1 = arith.constant 0 : i32
    return %c0_i32, %c0_i32_0 : i32, i32
  }
  func.func @transform_7(%arg0: i32) -> (i32, i32) {
    %c0_i32 = arith.constant 0 : i32
    %c0_i32_0 = arith.constant 0 : i32
    return %arg0, %c0_i32 : i32, i32
  }
}

</mosaic_0001>

<bundles_post_ra>
// kernel: stock_predictor_forward.1
= control target key start
LH: loop header
LB: loop body
LE: loop exit
PB: predicated region body
PF: predicated region fallthrough
CT: control target
= control target key end

     0   :  { %vm112_vm0 = vcmask 1045504   ;;  %vm63_vm1 = vcmask 48128   ;;  %vm197_vm2 = vcmask 523264   ;;  %vm346_vm3 = vcmask 261120   ;;  %s782_s1 = inlined_call_operand.vmem [shape: f32[6,64], index: 1, kind: input, shape index: {}]   ;;  %s783_s0 = inlined_call_operand.vmem [shape: f32[128,6], index: 0, kind: input, shape index: {}]   ;;  %s784_s2 = inlined_call_operand.vmem [shape: f32[1,64], index: 2, kind: input, shape index: {}]   ;;  %s785_s3 = inlined_call_operand.vmem [shape: f32[64,32], index: 3, kind: input, shape index: {}]   ;;  %s786_s4 = inlined_call_operand.vmem [shape: f32[1,32], index: 4, kind: input, shape index: {}]   ;;  %s787_s5 = inlined_call_operand.vmem [shape: f32[1,32], index: 5, kind: input, shape index: {}]   ;;  %s788_s6 = inlined_call_operand.<no memory space> [shape: f32[1,1], index: 6, kind: input, shape index: {}]   ;;  %s789_s7 = inlined_call_operand.vmem [shape: f32[128,1], index: 7, kind: output, shape index: {}]  }
   0x1   :  { %v28_v0 = vld [vmem:[%s782_s1] sm:$0x3f]  ;;  %v48_v2 = vld [vmem:[%s783_s0 + $0x8] sm:$0xff]  ;;  %v49_v3 = vld [vmem:[%s783_s0 + $0x10] sm:$0xff]  ;;  %vm414_vm4 = vcmask 7168  }
   0x2   :  { %v47_v1 = vld [vmem:[%s783_s0] sm:$0xff]  ;;  %435 = vmatpush.msk.msra.mxu0 %vm112_vm0, %v28_v0  ;;  %468 = vmatpush.msk.msra.mxu3 %vm112_vm0, %v28_v0  ;;  %v50_v4 = vld [vmem:[%s783_s0 + $0x18] sm:$0xff]  ;;  %v56_v5 = vld [vmem:[%s783_s0 + $0x48] sm:$0xff] }
   0x3   :  { %436 = vmatmul.msk.f32.vlgmr.msra.gmra.mxu0 %vm63_vm1, %v47_v1  ;;  %445 = vmatmul.msk.f32.vlgmr.msra.gmra.mxu3 %vm63_vm1, %v56_v5  ;;  %v51_v6 = vld [vmem:[%s783_s0 + $0x20] sm:$0xff]  ;;  %v57_v7 = vld [vmem:[%s783_s0 + $0x50] sm:$0xff]  ;;  %v52_v8 = vld [vmem:[%s783_s0 + $0x28] sm:$0xff] }
   0x4   :  { %v58_v9 = vld [vmem:[%s783_s0 + $0x58] sm:$0xff]  ;;  %v35_v11 = vld [vmem:[%s785_s3 + $0x30] sm:$0xff]  ;;  %v34_v12 = vld [vmem:[%s785_s3 + $0x28] sm:$0xff] }
   0x5   :  { %v36_v10 = vld [vmem:[%s785_s3 + $0x38] sm:$0xff]  ;;  %v53_v13 = vld [vmem:[%s783_s0 + $0x30] sm:$0xff]  ;;  %v33_v14 = vld [vmem:[%s785_s3 + $0x20] sm:$0xff] }
   0x6   :  { %254 = vmatpush.msra.mxu1 %v36_v10  ;;  %469 = vmatpush.msra.mxu2 %v36_v10  ;;  %v59_v15 = vld [vmem:[%s783_s0 + $0x60] sm:$0xff]  ;;  %v32_v16 = vld [vmem:[%s785_s3 + $0x18] sm:$0xff]  ;;  %v60_v18 = vld [vmem:[%s783_s0 + $0x68] sm:$0xff] }
   0x7   :  { %470 = vmatpush.msrb.mxu3 %v36_v10  ;;  %v54_v17 = vld [vmem:[%s783_s0 + $0x38] sm:$0xff]  ;;  %v55_v19 = vld [vmem:[%s783_s0 + $0x40] sm:$0xff]  ;;  %v61_v20 = vld [vmem:[%s783_s0 + $0x70] sm:$0xff] }
   0x8   :  { %255 = vmatpush.msra.mxu1 %v35_v11  ;;  %471 = vmatpush.msra.mxu2 %v35_v11  ;;  %v62_v21 = vld [vmem:[%s783_s0 + $0x78] sm:$0xff]  ;;  %v31_v22 = vld [vmem:[%s785_s3 + $0x10] sm:$0xff]  ;;  %v30_v23 = vld [vmem:[%s785_s3 + $0x8] sm:$0xff] }
   0x9   :  { %472 = vmatpush.msrb.mxu3 %v35_v11  ;;  %v29_v24 = vld [vmem:[%s785_s3] sm:$0xff] }
   0xa   :  { %256 = vmatpush.msra.mxu1 %v34_v12  ;;  %473 = vmatpush.msra.mxu2 %v34_v12  ;;  %v623_v25 = vld [vmem:[%s784_s2] ss:$0 sm:$0xff] }
   0xb   :  { %437 = vmatmul.msk.f32.gmra.mxu0 %vm63_vm1, %v48_v2  ;;  %446 = vmatmul.msk.f32.gmra.mxu3 %vm63_vm1, %v57_v7  ;;  %v660_v10 = vld [vmem:[%s786_s4] ss:$0 sm:$0xff] }
   0xc   :  { %474 = vmatpush.msrb.mxu3 %v34_v12  ;;  %257 = vmatpush.msra.mxu1 %v33_v14 }
   0xd   :  { %475 = vmatpush.msra.mxu2 %v33_v14 }
   0xe   :  { %258 = vmatpush.msra.mxu1 %v32_v16  ;;  %476 = vmatpush.msrb.mxu3 %v33_v14 }
   0xf   :  { %477 = vmatpush.msra.mxu2 %v32_v16 }
  0x10   :  { %478 = vmatpush.msrb.mxu3 %v32_v16  ;;  %259 = vmatpush.msra.mxu1 %v31_v22 }
  0x11   :  { %479 = vmatpush.msra.mxu2 %v31_v22 }
  0x12   :  { %480 = vmatpush.msrb.mxu3 %v31_v22  ;;  %260 = vmatpush.msra.mxu1 %v30_v23 }
  0x13   :  { %438 = vmatmul.msk.f32.gmra.mxu0 %vm63_vm1, %v49_v3  ;;  %447 = vmatmul.msk.f32.gmra.mxu3 %vm63_vm1, %v58_v9 }
  0x14   :  { %481 = vmatpush.msra.mxu2 %v30_v23  ;;  %482 = vmatpush.msrb.mxu3 %v30_v23 }
  0x15   :  { %261 = vmatpush.msra.mxu1 %v29_v24 }
  0x16   :  { %483 = vmatpush.msra.mxu2 %v29_v24  ;;  %484 = vmatpush.msrb.mxu3 %v29_v24 }
  0x1b   :  { %439 = vmatmul.msk.f32.gmra.mxu0 %vm63_vm1, %v50_v4  ;;  %448 = vmatmul.msk.f32.gmra.mxu3 %vm63_vm1, %v59_v15 }
  0x23   :  { %440 = vmatmul.msk.f32.gmra.mxu0 %vm63_vm1, %v51_v6  ;;  %449 = vmatmul.msk.f32.gmra.mxu3 %vm63_vm1, %v60_v18 }
  0x2b   :  { %441 = vmatmul.msk.f32.gmra.mxu0 %vm63_vm1, %v52_v8  ;;  %450 = vmatmul.msk.f32.gmra.mxu3 %vm63_vm1, %v61_v20 }
  0x33   :  { %442 = vmatmul.msk.f32.gmra.mxu0 %vm63_vm1, %v53_v13  ;;  %451 = vmatmul.msk.f32.gmra.mxu3 %vm63_vm1, %v62_v21  ;;  %v666_v13 = vld [vmem:[%s787_s5] ss:$0 sm:$0xff] }
  0x3b   :  { %443 = vmatmul.msk.f32.gmra.mxu0 %vm63_vm1, %v54_v17 }
  0x43   :  { %444 = vmatmul.msk.f32.gmra.mxu0 %vm63_vm1, %v55_v19 }
  0x80   :  { %v133_v26 = vpop.f32.mrf.mxu0 }
  0x81   :  { %v134_v27 = vadd.f32 %v623_v25, %v133_v26 }
  0x83   :  { %v181_v28 = vmax.f32 %v134_v27, 0.0 }
  0x85   :  { %452 = vmatmul.msk.f32.vlgmr.msra.gmra.mxu1 %vm197_vm2, %v181_v28 }
  0x86   :  { %v160_v39 = vpop.f32.mrf.mxu3 }
  0x87   :  { %v161_v58 = vadd.f32 %v623_v25, %v160_v39 }
  0x88   :  { %v136_v29 = vpop.f32.mrf.mxu0 }
  0x89   :  { %v137_v30 = vadd.f32 %v623_v25, %v136_v29  ;;  %v190_v60 = vmax.f32 %v161_v58, 0.0 }
  0x8b   :  { %v182_v31 = vmax.f32 %v137_v30, 0.0 }
  0x8d   :  { %453 = vmatmul.msk.f32.gmra.mxu1 %vm197_vm2, %v182_v31 }
  0x8e   :  { %v163_v43 = vpop.f32.mrf.mxu3 }
  0x8f   :  { %v164_v61 = vadd.f32 %v623_v25, %v163_v43 }
  0x90   :  { %v139_v32 = vpop.f32.mrf.mxu0 }
  0x91   :  { %v140_v33 = vadd.f32 %v623_v25, %v139_v32  ;;  %v191_v0 = vmax.f32 %v164_v61, 0.0 }
  0x93   :  { %v183_v34 = vmax.f32 %v140_v33, 0.0 }
  0x95   :  { %454 = vmatmul.msk.f32.gmra.mxu1 %vm197_vm2, %v183_v34 }
  0x96   :  { %v166_v47 = vpop.f32.mrf.mxu3 }
  0x97   :  { %v167_v2 = vadd.f32 %v623_v25, %v166_v47 }
  0x98   :  { %v142_v35 = vpop.f32.mrf.mxu0 }
  0x99   :  { %v143_v36 = vadd.f32 %v623_v25, %v142_v35  ;;  %v192_v3 = vmax.f32 %v167_v2, 0.0 }
  0x9b   :  { %v184_v37 = vmax.f32 %v143_v36, 0.0 }
  0x9d   :  { %455 = vmatmul.msk.f32.gmra.mxu1 %vm197_vm2, %v184_v37 }
  0x9e   :  { %v169_v51 = vpop.f32.mrf.mxu3 }
  0x9f   :  { %v170_v4 = vadd.f32 %v623_v25, %v169_v51 }
  0xa0   :  { %v145_v38 = vpop.f32.mrf.mxu0 }
  0xa1   :  { %v146_v40 = vadd.f32 %v623_v25, %v145_v38  ;;  %v193_v5 = vmax.f32 %v170_v4, 0.0 }
  0xa3   :  { %v185_v41 = vmax.f32 %v146_v40, 0.0 }
  0xa5   :  { %456 = vmatmul.msk.f32.gmra.mxu1 %vm197_vm2, %v185_v41 }
  0xa6   :  { %v172_v55 = vpop.f32.mrf.mxu3 }
  0xa7   :  { %v173_v6 = vadd.f32 %v623_v25, %v172_v55 }
  0xa8   :  { %v148_v42 = vpop.f32.mrf.mxu0 }
  0xa9   :  { %v149_v44 = vadd.f32 %v623_v25, %v148_v42  ;;  %v194_v7 = vmax.f32 %v173_v6, 0.0 }
  0xab   :  { %v186_v45 = vmax.f32 %v149_v44, 0.0 }
  0xad   :  { %457 = vmatmul.msk.f32.gmra.mxu1 %vm197_vm2, %v186_v45 }
  0xae   :  { %v175_v59 = vpop.f32.mrf.mxu3 }
  0xaf   :  { %v176_v8 = vadd.f32 %v623_v25, %v175_v59 }
  0xb0   :  { %v151_v46 = vpop.f32.mrf.mxu0 }
  0xb1   :  { %v152_v48 = vadd.f32 %v623_v25, %v151_v46  ;;  %v195_v9 = vmax.f32 %v176_v8, 0.0 }
  0xb3   :  { %v187_v49 = vmax.f32 %v152_v48, 0.0 }
  0xb5   :  { %458 = vmatmul.msk.f32.gmra.mxu1 %vm197_vm2, %v187_v49 }
  0xb6   :  { %v178_v62 = vpop.f32.mrf.mxu3 }
  0xb7   :  { %v179_v63 = vadd.f32 %v623_v25, %v178_v62 }
  0xb8   :  { %v154_v50 = vpop.f32.mrf.mxu0 }
  0xb9   :  { %v155_v52 = vadd.f32 %v623_v25, %v154_v50  ;;  %v196_v1 = vmax.f32 %v179_v63, 0.0 }
  0xbb   :  { %v188_v53 = vmax.f32 %v155_v52, 0.0  ;;  %467 = vmatmul.msk.f32.vlgmr.msrb.gmra.mxu3 %vm197_vm2, %v196_v1 }
  0xbd   :  { %459 = vmatmul.msk.f32.vlgmr.msra.gmra.mxu2 %vm197_vm2, %v188_v53 }
  0xc0   :  { %v157_v54 = vpop.f32.mrf.mxu0 }
  0xc1   :  { %v158_v56 = vadd.f32 %v623_v25, %v157_v54 }
  0xc3   :  { %v189_v57 = vmax.f32 %v158_v56, 0.0 }
  0xc5   :  { %460 = vmatmul.msk.f32.gmra.mxu2 %vm197_vm2, %v189_v57 }
  0xcd   :  { %461 = vmatmul.msk.f32.gmra.mxu2 %vm197_vm2, %v190_v60  ;;  %v12_v60 = vstv %s788_s6 }
  0xce   :  { %13 = vst [vmem:[#allocation2] sm:$0x1] %v12_v60 }
  0xd5   :  { %462 = vmatmul.msk.f32.gmra.mxu2 %vm197_vm2, %v191_v0 }
  0xdd   :  { %463 = vmatmul.msk.f32.gmra.mxu2 %vm197_vm2, %v192_v3 }
  0xe5   :  { %464 = vmatmul.msk.f32.gmra.mxu2 %vm197_vm2, %v193_v5 }
  0xed   :  { %465 = vmatmul.msk.f32.gmra.mxu2 %vm197_vm2, %v194_v7 }
  0xf5   :  { %466 = vmatmul.msk.f32.gmra.mxu2 %vm197_vm2, %v195_v9 }
 0x102   :  { %v263_v11 = vpop.f32.mrf.mxu1 }
 0x103   :  { %v264_v12 = vadd.f32 %v660_v10, %v263_v11 }
 0x105   :  { %v311_v14 = vmax.f32 %v264_v12, 0.0 }
 0x107   :  { %v330_v15 = vmul.f32 %v666_v13, %v311_v14 }
 0x109   :  { %v347_v16 = vsel %vm346_vm3, %v330_v15, 0.0 }
 0x10a   :  { %v266_v17 = vpop.f32.mrf.mxu1  ;;  %348 = vadd.xlane.f32.xlu0 %v347_v16 }
 0x10b   :  { %v267_v18 = vadd.f32 %v660_v10, %v266_v17 }
 0x10d   :  { %v312_v19 = vmax.f32 %v267_v18, 0.0 }
 0x10f   :  { %v331_v20 = vmul.f32 %v666_v13, %v312_v19 }
 0x111   :  { %v350_v21 = vsel %vm346_vm3, %v331_v20, 0.0 }
 0x112   :  { %v269_v22 = vpop.f32.mrf.mxu1  ;;  %351 = vadd.xlane.f32.xlu0 %v350_v21 }
 0x113   :  { %v270_v23 = vadd.f32 %v660_v10, %v269_v22 }
 0x115   :  { %v313_v24 = vmax.f32 %v270_v23, 0.0 }
 0x117   :  { %v332_v25 = vmul.f32 %v666_v13, %v313_v24 }
 0x119   :  { %v353_v26 = vsel %vm346_vm3, %v332_v25, 0.0 }
 0x11a   :  { %v272_v27 = vpop.f32.mrf.mxu1  ;;  %354 = vadd.xlane.f32.xlu1 %v353_v26 }
 0x11b   :  { %v273_v28 = vadd.f32 %v660_v10, %v272_v27 }
 0x11d   :  { %v314_v29 = vmax.f32 %v273_v28, 0.0  ;;  %v488_v28 = vld [vmem:[#allocation2] ss:$0 sm:$0xff] }
 0x11f   :  { %v333_v30 = vmul.f32 %v666_v13, %v314_v29 }
 0x121   :  { %v356_v31 = vsel %vm346_vm3, %v333_v30, 0.0 }
 0x122   :  { %v275_v32 = vpop.f32.mrf.mxu1  ;;  %357 = vadd.xlane.f32.xlu1 %v356_v31 }
 0x123   :  { %v276_v33 = vadd.f32 %v660_v10, %v275_v32 }
 0x125   :  { %v315_v34 = vmax.f32 %v276_v33, 0.0 }
 0x127   :  { %v334_v35 = vmul.f32 %v666_v13, %v315_v34 }
 0x129   :  { %v359_v36 = vsel %vm346_vm3, %v334_v35, 0.0 }
 0x12a   :  { %v278_v37 = vpop.f32.mrf.mxu1  ;;  %360 = vadd.xlane.f32.xlu2 %v359_v36 }
 0x12b   :  { %v279_v38 = vadd.f32 %v660_v10, %v278_v37 }
 0x12d   :  { %v316_v39 = vmax.f32 %v279_v38, 0.0 }
 0x12f   :  { %v335_v40 = vmul.f32 %v666_v13, %v316_v39 }
 0x131   :  { %v362_v41 = vsel %vm346_vm3, %v335_v40, 0.0 }
 0x132   :  { %v281_v42 = vpop.f32.mrf.mxu1  ;;  %363 = vadd.xlane.f32.xlu2 %v362_v41 }
 0x133   :  { %v282_v43 = vadd.f32 %v660_v10, %v281_v42 }
 0x135   :  { %v317_v44 = vmax.f32 %v282_v43, 0.0 }
 0x137   :  { %v336_v45 = vmul.f32 %v666_v13, %v317_v44 }
 0x139   :  { %v365_v46 = vsel %vm346_vm3, %v336_v45, 0.0 }
 0x13a   :  { %366 = vadd.xlane.f32.xlu0 %v365_v46 }
 0x13e   :  { %v308_v8 = vpop.f32.mrf.mxu3 }
 0x13f   :  { %v309_v14 = vadd.f32 %v660_v10, %v308_v8 }
 0x140   :  { %v284_v47 = vpop.f32.mrf.mxu2 }
 0x141   :  { %v285_v48 = vadd.f32 %v660_v10, %v284_v47  ;;  %v326_v17 = vmax.f32 %v309_v14, 0.0 }
 0x143   :  { %v318_v49 = vmax.f32 %v285_v48, 0.0  ;;  %v345_v21 = vmul.f32 %v666_v13, %v326_v17 }
 0x145   :  { %v337_v50 = vmul.f32 %v666_v13, %v318_v49  ;;  %v392_v24 = vsel %vm346_vm3, %v345_v21, 0.0 }
 0x147   :  { %v368_v51 = vsel %vm346_vm3, %v337_v50, 0.0 }
 0x148   :  { %v287_v52 = vpop.f32.mrf.mxu2  ;;  %369 = vadd.xlane.f32.xlu1 %v368_v51 }
 0x149   :  { %v288_v53 = vadd.f32 %v660_v10, %v287_v52 }
 0x14b   :  { %v319_v54 = vmax.f32 %v288_v53, 0.0 }
 0x14d   :  { %v338_v55 = vmul.f32 %v666_v13, %v319_v54 }
 0x14f   :  { %v371_v56 = vsel %vm346_vm3, %v338_v55, 0.0 }
 0x150   :  { %v290_v57 = vpop.f32.mrf.mxu2  ;;  %372 = vadd.xlane.f32.xlu2 %v371_v56 }
 0x151   :  { %v291_v58 = vadd.f32 %v660_v10, %v290_v57 }
 0x153   :  { %v320_v59 = vmax.f32 %v291_v58, 0.0 }
 0x155   :  { %v339_v61 = vmul.f32 %v666_v13, %v320_v59 }
 0x157   :  { %v374_v62 = vsel %vm346_vm3, %v339_v61, 0.0 }
 0x158   :  { %v293_v63 = vpop.f32.mrf.mxu2  ;;  %375 = vadd.xlane.f32.xlu0 %v374_v62 }
 0x159   :  { %v294_v0 = vadd.f32 %v660_v10, %v293_v63 }
 0x15b   :  { %v321_v1 = vmax.f32 %v294_v0, 0.0 }
 0x15d   :  { %v340_v2 = vmul.f32 %v666_v13, %v321_v1 }
 0x15f   :  { %v377_v3 = vsel %vm346_vm3, %v340_v2, 0.0 }
 0x160   :  { %v296_v4 = vpop.f32.mrf.mxu2  ;;  %378 = vadd.xlane.f32.xlu1 %v377_v3 }
 0x161   :  { %v297_v5 = vadd.f32 %v660_v10, %v296_v4 }
 0x163   :  { %v322_v6 = vmax.f32 %v297_v5, 0.0 }
 0x165   :  { %v341_v7 = vmul.f32 %v666_v13, %v322_v6 }
 0x167   :  { %v380_v9 = vsel %vm346_vm3, %v341_v7, 0.0 }
 0x168   :  { %v299_v11 = vpop.f32.mrf.mxu2  ;;  %381 = vadd.xlane.f32.xlu2 %v380_v9 }
 0x169   :  { %v300_v12 = vadd.f32 %v660_v10, %v299_v11 }
 0x16b   :  { %v323_v15 = vmax.f32 %v300_v12, 0.0 }
 0x16d   :  { %v342_v16 = vmul.f32 %v666_v13, %v323_v15 }
 0x16f   :  { %v383_v18 = vsel %vm346_vm3, %v342_v16, 0.0 }
 0x170   :  { %v302_v19 = vpop.f32.mrf.mxu2  ;;  %384 = vadd.xlane.f32.xlu0 %v383_v18 }
 0x171   :  { %v303_v20 = vadd.f32 %v660_v10, %v302_v19 }
 0x173   :  { %v324_v22 = vmax.f32 %v303_v20, 0.0 }
 0x175   :  { %v343_v23 = vmul.f32 %v666_v13, %v324_v22 }
 0x177   :  { %v386_v25 = vsel %vm346_vm3, %v343_v23, 0.0 }
 0x178   :  { %v305_v26 = vpop.f32.mrf.mxu2  ;;  %387 = vadd.xlane.f32.xlu1 %v386_v25  ;;  %393 = vadd.xlane.f32.xlu0 %v392_v24 }
 0x179   :  { %v306_v27 = vadd.f32 %v660_v10, %v305_v26 }
 0x17b   :  { %v325_v29 = vmax.f32 %v306_v27, 0.0 }
 0x17d   :  { %v349_v30 = vpop.xlane.xlu0 %348  ;;  %v344_v31 = vmul.f32 %v666_v13, %v325_v29 }
 0x17e   :  { %v398_v32 = vadd.f32 %v488_v28, %v349_v30 }
 0x17f   :  { %v389_v33 = vsel %vm346_vm3, %v344_v31, 0.0 }
 0x180   :  { %415 = vst.msk [vmem:[%s789_s7] sm:$0xff] %vm414_vm4, %v398_v32  ;;  %390 = vadd.xlane.f32.xlu2 %v389_v33 }
 0x185   :  { %v352_v34 = vpop.xlane.xlu0 %351 }
 0x186   :  { %v399_v35 = vadd.f32 %v488_v28, %v352_v34 }
 0x188   :  { %416 = vst.msk [vmem:[%s789_s7 + $0x8] sm:$0xff] %vm414_vm4, %v399_v35 }
 0x18d   :  { %v355_v10 = vpop.xlane.xlu1 %354 }
 0x18e   :  { %v400_v36 = vadd.f32 %v488_v28, %v355_v10 }
 0x190   :  { %417 = vst.msk [vmem:[%s789_s7 + $0x10] sm:$0xff] %vm414_vm4, %v400_v36 }
 0x195   :  { %v358_v13 = vpop.xlane.xlu1 %357 }
 0x196   :  { %v401_v37 = vadd.f32 %v488_v28, %v358_v13 }
 0x198   :  { %418 = vst.msk [vmem:[%s789_s7 + $0x18] sm:$0xff] %vm414_vm4, %v401_v37 }
 0x19d   :  { %v361_v38 = vpop.xlane.xlu2 %360 }
 0x19e   :  { %v402_v39 = vadd.f32 %v488_v28, %v361_v38 }
 0x1a0   :  { %419 = vst.msk [vmem:[%s789_s7 + $0x20] sm:$0xff] %vm414_vm4, %v402_v39 }
 0x1a5   :  { %v364_v40 = vpop.xlane.xlu2 %363 }
 0x1a6   :  { %v403_v41 = vadd.f32 %v488_v28, %v364_v40 }
 0x1a8   :  { %420 = vst.msk [vmem:[%s789_s7 + $0x28] sm:$0xff] %vm414_vm4, %v403_v41 }
 0x1ad   :  { %v367_v42 = vpop.xlane.xlu0 %366 }
 0x1ae   :  { %v404_v43 = vadd.f32 %v488_v28, %v367_v42 }
 0x1b0   :  { %421 = vst.msk [vmem:[%s789_s7 + $0x30] sm:$0xff] %vm414_vm4, %v404_v43 }
 0x1bb   :  { %v370_v44 = vpop.xlane.xlu1 %369 }
 0x1bc   :  { %v405_v45 = vadd.f32 %v488_v28, %v370_v44 }
 0x1be   :  { %422 = vst.msk [vmem:[%s789_s7 + $0x38] sm:$0xff] %vm414_vm4, %v405_v45 }
 0x1c3   :  { %v373_v46 = vpop.xlane.xlu2 %372 }
 0x1c4   :  { %v406_v47 = vadd.f32 %v488_v28, %v373_v46 }
 0x1c6   :  { %423 = vst.msk [vmem:[%s789_s7 + $0x40] sm:$0xff] %vm414_vm4, %v406_v47 }
 0x1cb   :  { %v376_v48 = vpop.xlane.xlu0 %375 }
 0x1cc   :  { %v407_v49 = vadd.f32 %v488_v28, %v376_v48 }
 0x1ce   :  { %424 = vst.msk [vmem:[%s789_s7 + $0x48] sm:$0xff] %vm414_vm4, %v407_v49 }
 0x1d3   :  { %v379_v50 = vpop.xlane.xlu1 %378 }
 0x1d4   :  { %v408_v51 = vadd.f32 %v488_v28, %v379_v50 }
 0x1d6   :  { %425 = vst.msk [vmem:[%s789_s7 + $0x50] sm:$0xff] %vm414_vm4, %v408_v51 }
 0x1db   :  { %v382_v52 = vpop.xlane.xlu2 %381 }
 0x1dc   :  { %v409_v53 = vadd.f32 %v488_v28, %v382_v52 }
 0x1de   :  { %426 = vst.msk [vmem:[%s789_s7 + $0x58] sm:$0xff] %vm414_vm4, %v409_v53 }
 0x1e3   :  { %v385_v54 = vpop.xlane.xlu0 %384 }
 0x1e4   :  { %v410_v55 = vadd.f32 %v488_v28, %v385_v54 }
 0x1e6   :  { %427 = vst.msk [vmem:[%s789_s7 + $0x60] sm:$0xff] %vm414_vm4, %v410_v55 }
 0x1eb   :  { %v388_v56 = vpop.xlane.xlu1 %387  ;;  %v394_v57 = vpop.xlane.xlu0 %393 }
 0x1ec   :  { %v411_v58 = vadd.f32 %v488_v28, %v388_v56  ;;  %v413_v59 = vadd.f32 %v488_v28, %v394_v57 }
 0x1ee   :  { %428 = vst.msk [vmem:[%s789_s7 + $0x68] sm:$0xff] %vm414_vm4, %v411_v58 }
 0x1ef   :  { %430 = vst.msk [vmem:[%s789_s7 + $0x78] sm:$0xff] %vm414_vm4, %v413_v59 }
 0x1f3   :  { %v391_v60 = vpop.xlane.xlu2 %390 }
 0x1f4   :  { %v412_v61 = vadd.f32 %v488_v28, %v391_v60 }
 0x1f6   :  { %429 = vst.msk [vmem:[%s789_s7 + $0x70] sm:$0xff] %vm414_vm4, %v412_v61 }

</bundles_post_ra>
